<compile_context>
chip_gen: v6e
topology: v6e:2x2x1
jax: 0.10.0
libtpu: 0.0.40
codegen_flags: <defaults>
</compile_context>

<pallas_src>
import functools

import numpy as np
import jax
import jax.numpy as jnp
from jax.experimental import pallas as pl
from jax.experimental.pallas import tpu as pltpu


# ----------------------------------------------------------------------------
# Fused kernel: roll+mask im2col -> matmul (conv1) -> roll+mask im2col -> matmul
# (polyphase conv2).  Everything is (channels, H*W): spatial rides the lane axis.
# ----------------------------------------------------------------------------
def _fused_upsampler_kernel(x_ref, w1_ref, b1_ref, w2_ref, b2_ref, m_ref,
                            o_ref, p1_ref, p2_ref, *, H, W, Cin, C1, C2, k, pad):
    # x_ref:  (1, Cin, H*W)        input image, channel-major, spatial flattened
    # w1_ref: (C1, k*k*Cin)        conv1 weights (transposed im2col, phase-major rows)
    # b1_ref: (C1, 1)
    # w2_ref: (C2, k*k*C1)         polyphase conv2 weights (transposed im2col)
    # b2_ref: (C2, 1)
    # m_ref:  (k*k, H*W)           per-tap border masks (1.0 valid / 0.0 out of range)
    # o_ref:  (1, C2, H*W)         output, phase-stacked channels, lane-dense last dim
    # p1_ref: VMEM (k*k*Cin, H*W)  conv1 im2col patches scratch
    # p2_ref: VMEM (k*k*C1,  H*W)  conv2 im2col patches scratch
    HW = H * W
    x = x_ref[0]                                           # (Cin, HW) f32

    # ---- conv1 im2col: each tap = lane-roll of the flattened image, borders masked ----
    for kh in range(k):
        for kw in range(k):
            tap = kh * k + kw
            s = (kh - pad) * W + (kw - pad)                # static per-tap lane shift
            shifted = x if s == 0 else pltpu.roll(x, (-s) % HW, 1)
            p1_ref[tap * Cin:(tap + 1) * Cin, :] = (
                shifted * m_ref[tap:tap + 1, :]).astype(p1_ref.dtype)

    # ---- conv1: one MXU matmul, channels on M, H*W on the lane axis ----
    y = jnp.dot(w1_ref[...], p1_ref[...],
                preferred_element_type=jnp.float32) + b1_ref[...]       # (C1, HW) f32

    # ---- conv2 (polyphase, low-res grid): same roll+mask im2col, one matmul ----
    for kh in range(k):
        for kw in range(k):
            tap = kh * k + kw
            s = (kh - pad) * W + (kw - pad)
            shifted = y if s == 0 else pltpu.roll(y, (-s) % HW, 1)
            p2_ref[tap * C1:(tap + 1) * C1, :] = (
                shifted * m_ref[tap:tap + 1, :]).astype(p2_ref.dtype)

    out = jnp.dot(w2_ref[...], p2_ref[...],
                  preferred_element_type=jnp.float32) + b2_ref[...]     # (C2, HW)
    o_ref[0] = out.astype(o_ref.dtype)


# ----------------------------------------------------------------------------
# Weight rewrites (trace-time, tiny): fold PixelShuffle into conv1 / conv2.
# ----------------------------------------------------------------------------
def _phase_major_perm(nf, r):
    # new conv1 output channel (p*nf + c)  <-  torch channel (c*r*r + p), p = i*r + j
    return (np.arange(r * r)[:, None] + np.arange(nf)[None, :] * (r * r)).reshape(-1)


def _polyphase_conv2_weights(w2, r):
    """Rewrite conv2-after-PixelShuffle(r) as a k x k conv on the low-res grid.

    w2: (k, k, nf, Cout) HWIO weights of the high-res conv.  Returns
    (k, k, r*r*nf, r*r*Cout) where input channel (pi*r+pj)*nf + c is the
    phase-(pi,pj) conv1 output and output channel (i*r+j)*Cout + o is the
    high-res output at sub-pixel phase (i, j).
    """
    k, _, nf, Cout = w2.shape
    pad = (k - 1) // 2
    a = np.arange(k) - pad                      # low-res tap offsets
    # d[A, p_in, p_out] = r*a + p_in - p_out + pad  (same formula for rows / cols)
    d = (r * a[:, None, None] + np.arange(r)[None, :, None]
         - np.arange(r)[None, None, :] + pad)
    valid = (d >= 0) & (d < k)
    # Every original tap must be covered exactly once per output phase.
    for po in range(r):
        got = sorted(d[:, :, po][valid[:, :, po]].tolist())
        assert got == list(range(k)), ("polyphase coverage failed", po, got)
    dc = np.clip(d, 0, k - 1)
    DY = dc[:, None, :, None, :, None]          # axes: (A, -, pi, -, i, -)
    DX = dc[None, :, None, :, None, :]          # axes: (-, B, -, pj, -, j)
    V = valid[:, None, :, None, :, None] & valid[None, :, None, :, None, :]
    g = w2[DY, DX] * jnp.asarray(V, w2.dtype)[..., None, None]   # (k,k,r,r,r,r,nf,Cout)
    g = jnp.transpose(g, (0, 1, 2, 3, 6, 4, 5, 7))               # (A,B,pi,pj,c,i,j,o)
    return g.reshape(k, k, r * r * nf, r * r * Cout)


def _tap_masks(H, W, k, pad):
    hh, ww = np.meshgrid(np.arange(H), np.arange(W), indexing="ij")
    masks = np.zeros((k * k, H * W), np.float32)
    for kh in range(k):
        for kw in range(k):
            dy, dx = kh - pad, kw - pad
            v = (hh + dy >= 0) & (hh + dy < H) & (ww + dx >= 0) & (ww + dx < W)
            masks[kh * k + kw] = v.reshape(-1).astype(np.float32)
    return masks


# ----------------------------------------------------------------------------
# Forward (NCHW in / NCHW out, like the PyTorch module).
# ----------------------------------------------------------------------------
def upsampler_forward(x_nchw, params, scale, compute_dtype=jnp.float32):
    w1, b1, w2, b2 = params["w1"], params["b1"], params["w2"], params["b2"]
    N, Cin, H, W = x_nchw.shape
    r = scale
    nf = Cin
    k = w1.shape[0]
    C1 = r * r * nf
    Cout = w2.shape[3]
    C2 = r * r * Cout
    pad = (k - 1) // 2
    HW = H * W
    assert w1.shape == (k, k, nf, C1) and w2.shape == (k, k, nf, Cout)

    # Fold PixelShuffle into the weights (done once at trace time); transposed so the
    # in-kernel matmuls are (Cout_mat, K) x (K, H*W) with H*W on the lane axis.
    perm = _phase_major_perm(nf, r)
    w1f = jnp.transpose(
        w1[:, :, :, perm].reshape(k * k * nf, C1)).astype(compute_dtype)      # (C1, k*k*nf)
    b1f = b1[perm].reshape(C1, 1).astype(jnp.float32)
    w2f = jnp.transpose(
        _polyphase_conv2_weights(w2, r).reshape(k * k * C1, C2)).astype(compute_dtype)
    b2f = jnp.tile(b2, r * r).reshape(C2, 1).astype(jnp.float32)
    masks = jnp.asarray(_tap_masks(H, W, k, pad))                             # (k*k, HW)

    # NCHW -> (N, Cin, H*W) is a free reshape (no transpose pass over the image).
    x_flat = x_nchw.reshape(N, Cin, HW).astype(jnp.float32)

    kernel = functools.partial(_fused_upsampler_kernel, H=H, W=W, Cin=Cin,
                               C1=C1, C2=C2, k=k, pad=pad)

    flops = 2 * N * HW * (k * k * Cin * C1 + k * k * C1 * C2)
    bytes_accessed = 4 * (N * Cin * HW + C1 * k * k * Cin + C1 + C2 * k * k * C1
                          + C2 + k * k * HW + N * C2 * HW)

    out_flat = pl.pallas_call(
        kernel,
        out_shape=jax.ShapeDtypeStruct((N, C2, HW), jnp.float32),
        grid_spec=pltpu.PrefetchScalarGridSpec(
            num_scalar_prefetch=0,
            grid=(N,),
            in_specs=[
                pl.BlockSpec((1, Cin, HW), lambda n: (n, 0, 0)),
                pl.BlockSpec((C1, k * k * Cin), lambda n: (0, 0)),
                pl.BlockSpec((C1, 1), lambda n: (0, 0)),
                pl.BlockSpec((C2, k * k * C1), lambda n: (0, 0)),
                pl.BlockSpec((C2, 1), lambda n: (0, 0)),
                pl.BlockSpec((k * k, HW), lambda n: (0, 0)),
            ],
            out_specs=pl.BlockSpec((1, C2, HW), lambda n: (n, 0, 0)),
            scratch_shapes=[
                pltpu.VMEM((k * k * Cin, HW), compute_dtype),   # conv1 patches
                pltpu.VMEM((k * k * C1, HW), compute_dtype),    # conv2 patches
            ],
        ),
        compiler_params=pltpu.CompilerParams(
            dimension_semantics=("parallel",),
            vmem_limit_bytes=32 * 1024 * 1024),
        cost_estimate=pl.CostEstimate(flops=flops, transcendentals=0,
                                      bytes_accessed=bytes_accessed),
    )(x_flat, w1f, b1f, w2f, b2f, masks)

    # Un-stack the output phases (tiny, lane-dense layout plumbing on the final output):
    # channel (i*r+j)*Cout + o at low-res (h, w) is high-res pixel (h*r+i, w*r+j, o).
    out = out_flat.reshape(N, r, r, Cout, H, W)
    out = jnp.transpose(out, (0, 3, 4, 1, 5, 2))      # (n, o, h, i, w, j)
    return out.reshape(N, Cout, H * r, W * r)         # NCHW


def init_params(key, num_features, out_channels, k_size, scale):
    # Deterministic synthetic init (HWIO weights), mimicking Conv2d fan-in scaling.
    k1, k2, k3, k4 = jax.random.split(key, 4)
    c1_out = num_features * scale * scale
    s1 = 1.0 / (num_features * k_size * k_size) ** 0.5
    s2 = 1.0 / (num_features * k_size * k_size) ** 0.5
    return {
        "w1": jax.random.uniform(k1, (k_size, k_size, num_features, c1_out),
                                 jnp.float32, -s1, s1),
        "b1": jax.random.uniform(k2, (c1_out,), jnp.float32, -s1, s1),
        "w2": jax.random.uniform(k3, (k_size, k_size, num_features, out_channels),
                                 jnp.float32, -s2, s2),
        "b2": jax.random.uniform(k4, (out_channels,), jnp.float32, -s2, s2),
    }


if __name__ == "__main__":
    num_features, out_channels, k_size, scale = 4, 3, 3, 2
    N, H, W = 2, 16, 16

    key = jax.random.PRNGKey(0)
    kx, kp = jax.random.split(key)
    x = jax.random.normal(kx, (N, num_features, H, W), jnp.float32)  # NCHW
    params = init_params(kp, num_features, out_channels, k_size, scale)

    # Pure-JAX reference (same semantics as the PyTorch module).
    def ref_forward(x_nchw):
        def conv(xx, w, b):  # NCHW conv with HWIO weights, SAME padding
            y = jax.lax.conv_general_dilated(
                xx, w, (1, 1), "SAME",
                dimension_numbers=("NCHW", "HWIO", "NCHW"))
            return y + b[None, :, None, None]

        def ps(xx, r):  # torch PixelShuffle in NCHW
            n, c, h, w = xx.shape
            co = c // (r * r)
            xx = xx.reshape(n, co, r, r, h, w)
            xx = jnp.transpose(xx, (0, 1, 4, 2, 5, 3))
            return xx.reshape(n, co, h * r, w * r)

        y = conv(x_nchw, params["w1"], params["b1"])
        y = ps(y, scale)
        return conv(y, params["w2"], params["b2"])

    ref = jax.block_until_ready(ref_forward(x))

    # f32 path (strict check; exact same math as the reference up to accumulation order).
    fwd = jax.jit(functools.partial(upsampler_forward, scale=scale))
    out = jax.block_until_ready(fwd(x, params))
    assert out.shape == (N, out_channels, H * scale, W * scale), out.shape
    assert jnp.allclose(out, ref, atol=1e-4, rtol=1e-4), \
        float(jnp.max(jnp.abs(out - ref)))

    # bf16 MXU path (v6e/v7x perf option): bf16 patches/weights, f32 accumulation.
    fwd_bf16 = jax.jit(functools.partial(upsampler_forward, scale=scale,
                                         compute_dtype=jnp.bfloat16))
    out_bf16 = jax.block_until_ready(fwd_bf16(x, params))
    assert jnp.allclose(out_bf16, ref, atol=5e-2, rtol=5e-2), \
        float(jnp.max(jnp.abs(out_bf16 - ref)))

    print("KERNEL_OK")
</pallas_src>

<mosaic_0001>
module attributes {stable_mosaic.version = 11 : i64} {
  func.func @_fused_upsampler_kernel(%arg0: i32, %arg1: memref<1x4x256xf32, #tpu.memory_space<vmem>>, %arg2: memref<16x36xf32, #tpu.memory_space<vmem>>, %arg3: memref<16x1xf32, #tpu.memory_space<vmem>>, %arg4: memref<12x144xf32, #tpu.memory_space<vmem>>, %arg5: memref<12x1xf32, #tpu.memory_space<vmem>>, %arg6: memref<9x256xf32, #tpu.memory_space<vmem>>, %arg7: memref<1x12x256xf32, #tpu.memory_space<vmem>>, %arg8: memref<36x256xf32, #tpu.memory_space<vmem>>, %arg9: memref<144x256xf32, #tpu.memory_space<vmem>>) attributes {dimension_semantics = [#tpu.dimension_semantics<parallel>], iteration_bounds = array<i64: 2>, scalar_prefetch = 0 : i64, scratch_operands = 2 : i64, tpu.core_type = #tpu.core_type<tc>, window_params = [{transform_indices = @transform_0, window_bounds = array<i64: 1, 4, 256>}, {pipeline_mode = #tpu.pipeline_mode<synchronous>, transform_indices = @transform_1, window_bounds = array<i64: 16, 36>}, {pipeline_mode = #tpu.pipeline_mode<synchronous>, transform_indices = @transform_2, window_bounds = array<i64: 16, 1>}, {pipeline_mode = #tpu.pipeline_mode<synchronous>, transform_indices = @transform_3, window_bounds = array<i64: 12, 144>}, {pipeline_mode = #tpu.pipeline_mode<synchronous>, transform_indices = @transform_4, window_bounds = array<i64: 12, 1>}, {pipeline_mode = #tpu.pipeline_mode<synchronous>, transform_indices = @transform_5, window_bounds = array<i64: 9, 256>}, {transform_indices = @transform_6, window_bounds = array<i64: 1, 12, 256>}]} {
    %c0 = arith.constant 0 : index
    %c0_0 = arith.constant 0 : index
    %c0_1 = arith.constant 0 : index
    %0 = vector.load %arg1[%c0, %c0_0, %c0_1] : memref<1x4x256xf32, #tpu.memory_space<vmem>>, vector<1x4x256xf32>
    %1 = vector.shape_cast %0 : vector<1x4x256xf32> to vector<4x256xf32>
    %c17_i32 = arith.constant 17 : i32
    %2 = tpu.dynamic_rotate %1 by %c17_i32 dim 1 : vector<4x256xf32>, i32 -> vector<4x256xf32>
    %c0_2 = arith.constant 0 : index
    %c0_3 = arith.constant 0 : index
    %3 = vector.load %arg6[%c0_2, %c0_3] : memref<9x256xf32, #tpu.memory_space<vmem>>, vector<1x256xf32>
    %4 = vector.broadcast %3 : vector<1x256xf32> to vector<4x256xf32>
    %5 = arith.mulf %2, %4 : vector<4x256xf32>
    %c0_4 = arith.constant 0 : index
    %c0_5 = arith.constant 0 : index
    %6 = vector.load %arg8[%c0_4, %c0_5] : memref<36x256xf32, #tpu.memory_space<vmem>>, vector<4x256xf32>
    tpu.vector_store %arg8[%c0_4, %c0_5], %5 {strides = array<i32>} : memref<36x256xf32, #tpu.memory_space<vmem>>, vector<4x256xf32>,
    %c16_i32 = arith.constant 16 : i32
    %7 = tpu.dynamic_rotate %1 by %c16_i32 dim 1 : vector<4x256xf32>, i32 -> vector<4x256xf32>
    %c1 = arith.constant 1 : index
    %c0_6 = arith.constant 0 : index
    %8 = vector.load %arg6[%c1, %c0_6] : memref<9x256xf32, #tpu.memory_space<vmem>>, vector<1x256xf32>
    %9 = vector.broadcast %8 : vector<1x256xf32> to vector<4x256xf32>
    %10 = arith.mulf %7, %9 : vector<4x256xf32>
    %c4 = arith.constant 4 : index
    %c0_7 = arith.constant 0 : index
    %11 = vector.load %arg8[%c4, %c0_7] : memref<36x256xf32, #tpu.memory_space<vmem>>, vector<4x256xf32>
    tpu.vector_store %arg8[%c4, %c0_7], %10 {strides = array<i32>} : memref<36x256xf32, #tpu.memory_space<vmem>>, vector<4x256xf32>,
    %c15_i32 = arith.constant 15 : i32
    %12 = tpu.dynamic_rotate %1 by %c15_i32 dim 1 : vector<4x256xf32>, i32 -> vector<4x256xf32>
    %c2 = arith.constant 2 : index
    %c0_8 = arith.constant 0 : index
    %13 = vector.load %arg6[%c2, %c0_8] : memref<9x256xf32, #tpu.memory_space<vmem>>, vector<1x256xf32>
    %14 = vector.broadcast %13 : vector<1x256xf32> to vector<4x256xf32>
    %15 = arith.mulf %12, %14 : vector<4x256xf32>
    %c8 = arith.constant 8 : index
    %c0_9 = arith.constant 0 : index
    %16 = vector.load %arg8[%c8, %c0_9] : memref<36x256xf32, #tpu.memory_space<vmem>>, vector<4x256xf32>
    tpu.vector_store %arg8[%c8, %c0_9], %15 {strides = array<i32>} : memref<36x256xf32, #tpu.memory_space<vmem>>, vector<4x256xf32>,
    %c1_i32 = arith.constant 1 : i32
    %17 = tpu.dynamic_rotate %1 by %c1_i32 dim 1 : vector<4x256xf32>, i32 -> vector<4x256xf32>
    %c3 = arith.constant 3 : index
    %c0_10 = arith.constant 0 : index
    %18 = vector.load %arg6[%c3, %c0_10] : memref<9x256xf32, #tpu.memory_space<vmem>>, vector<1x256xf32>
    %19 = vector.broadcast %18 : vector<1x256xf32> to vector<4x256xf32>
    %20 = arith.mulf %17, %19 : vector<4x256xf32>
    %c12 = arith.constant 12 : index
    %c0_11 = arith.constant 0 : index
    %21 = vector.load %arg8[%c12, %c0_11] : memref<36x256xf32, #tpu.memory_space<vmem>>, vector<4x256xf32>
    tpu.vector_store %arg8[%c12, %c0_11], %20 {strides = array<i32>} : memref<36x256xf32, #tpu.memory_space<vmem>>, vector<4x256xf32>,
    %c4_12 = arith.constant 4 : index
    %c0_13 = arith.constant 0 : index
    %22 = vector.load %arg6[%c4_12, %c0_13] : memref<9x256xf32, #tpu.memory_space<vmem>>, vector<1x256xf32>
    %23 = vector.broadcast %22 : vector<1x256xf32> to vector<4x256xf32>
    %24 = arith.mulf %1, %23 : vector<4x256xf32>
    %c16 = arith.constant 16 : index
    %c0_14 = arith.constant 0 : index
    %25 = vector.load %arg8[%c16, %c0_14] : memref<36x256xf32, #tpu.memory_space<vmem>>, vector<4x256xf32>
    tpu.vector_store %arg8[%c16, %c0_14], %24 {strides = array<i32>} : memref<36x256xf32, #tpu.memory_space<vmem>>, vector<4x256xf32>,
    %c255_i32 = arith.constant 255 : i32
    %26 = tpu.dynamic_rotate %1 by %c255_i32 dim 1 : vector<4x256xf32>, i32 -> vector<4x256xf32>
    %c5 = arith.constant 5 : index
    %c0_15 = arith.constant 0 : index
    %27 = vector.load %arg6[%c5, %c0_15] : memref<9x256xf32, #tpu.memory_space<vmem>>, vector<1x256xf32>
    %28 = vector.broadcast %27 : vector<1x256xf32> to vector<4x256xf32>
    %29 = arith.mulf %26, %28 : vector<4x256xf32>
    %c20 = arith.constant 20 : index
    %c0_16 = arith.constant 0 : index
    %30 = vector.load %arg8[%c20, %c0_16] : memref<36x256xf32, #tpu.memory_space<vmem>>, vector<4x256xf32>
    tpu.vector_store %arg8[%c20, %c0_16], %29 {strides = array<i32>} : memref<36x256xf32, #tpu.memory_space<vmem>>, vector<4x256xf32>,
    %c241_i32 = arith.constant 241 : i32
    %31 = tpu.dynamic_rotate %1 by %c241_i32 dim 1 : vector<4x256xf32>, i32 -> vector<4x256xf32>
    %c6 = arith.constant 6 : index
    %c0_17 = arith.constant 0 : index
    %32 = vector.load %arg6[%c6, %c0_17] : memref<9x256xf32, #tpu.memory_space<vmem>>, vector<1x256xf32>
    %33 = vector.broadcast %32 : vector<1x256xf32> to vector<4x256xf32>
    %34 = arith.mulf %31, %33 : vector<4x256xf32>
    %c24 = arith.constant 24 : index
    %c0_18 = arith.constant 0 : index
    %35 = vector.load %arg8[%c24, %c0_18] : memref<36x256xf32, #tpu.memory_space<vmem>>, vector<4x256xf32>
    tpu.vector_store %arg8[%c24, %c0_18], %34 {strides = array<i32>} : memref<36x256xf32, #tpu.memory_space<vmem>>, vector<4x256xf32>,
    %c240_i32 = arith.constant 240 : i32
    %36 = tpu.dynamic_rotate %1 by %c240_i32 dim 1 : vector<4x256xf32>, i32 -> vector<4x256xf32>
    %c7 = arith.constant 7 : index
    %c0_19 = arith.constant 0 : index
    %37 = vector.load %arg6[%c7, %c0_19] : memref<9x256xf32, #tpu.memory_space<vmem>>, vector<1x256xf32>
    %38 = vector.broadcast %37 : vector<1x256xf32> to vector<4x256xf32>
    %39 = arith.mulf %36, %38 : vector<4x256xf32>
    %c28 = arith.constant 28 : index
    %c0_20 = arith.constant 0 : index
    %40 = vector.load %arg8[%c28, %c0_20] : memref<36x256xf32, #tpu.memory_space<vmem>>, vector<4x256xf32>
    tpu.vector_store %arg8[%c28, %c0_20], %39 {strides = array<i32>} : memref<36x256xf32, #tpu.memory_space<vmem>>, vector<4x256xf32>,
    %c239_i32 = arith.constant 239 : i32
    %41 = tpu.dynamic_rotate %1 by %c239_i32 dim 1 : vector<4x256xf32>, i32 -> vector<4x256xf32>
    %c8_21 = arith.constant 8 : index
    %c0_22 = arith.constant 0 : index
    %42 = vector.load %arg6[%c8_21, %c0_22] : memref<9x256xf32, #tpu.memory_space<vmem>>, vector<1x256xf32>
    %43 = vector.broadcast %42 : vector<1x256xf32> to vector<4x256xf32>
    %44 = arith.mulf %41, %43 : vector<4x256xf32>
    %c32 = arith.constant 32 : index
    %c0_23 = arith.constant 0 : index
    %45 = vector.load %arg8[%c32, %c0_23] : memref<36x256xf32, #tpu.memory_space<vmem>>, vector<4x256xf32>
    tpu.vector_store %arg8[%c32, %c0_23], %44 {strides = array<i32>} : memref<36x256xf32, #tpu.memory_space<vmem>>, vector<4x256xf32>,
    %c0_24 = arith.constant 0 : index
    %c0_25 = arith.constant 0 : index
    %46 = vector.load %arg2[%c0_24, %c0_25] : memref<16x36xf32, #tpu.memory_space<vmem>>, vector<16x36xf32>
    %c0_26 = arith.constant 0 : index
    %c0_27 = arith.constant 0 : index
    %47 = vector.load %arg8[%c0_26, %c0_27] : memref<36x256xf32, #tpu.memory_space<vmem>>, vector<36x256xf32>
    %cst = arith.constant dense<0.000000e+00> : vector<16x256xf32>
    %48 = tpu.matmul %46, %47, %cst {dimension_numbers = #tpu.dot_dimension_numbers<[1], [0], [0], [1], [0, 0, 1, 1], [], []>} : vector<16x36xf32>, vector<36x256xf32>, vector<16x256xf32> -> vector<16x256xf32>
    %c0_28 = arith.constant 0 : index
    %c0_29 = arith.constant 0 : index
    %49 = vector.load %arg3[%c0_28, %c0_29] : memref<16x1xf32, #tpu.memory_space<vmem>>, vector<16x1xf32>
    %50 = vector.broadcast %49 : vector<16x1xf32> to vector<16x256xf32>
    %51 = arith.addf %48, %50 : vector<16x256xf32>
    %c17_i32_30 = arith.constant 17 : i32
    %52 = tpu.dynamic_rotate %51 by %c17_i32_30 dim 1 : vector<16x256xf32>, i32 -> vector<16x256xf32>
    %c0_31 = arith.constant 0 : index
    %c0_32 = arith.constant 0 : index
    %53 = vector.load %arg6[%c0_31, %c0_32] : memref<9x256xf32, #tpu.memory_space<vmem>>, vector<1x256xf32>
    %54 = vector.broadcast %53 : vector<1x256xf32> to vector<16x256xf32>
    %55 = arith.mulf %52, %54 : vector<16x256xf32>
    %c0_33 = arith.constant 0 : index
    %c0_34 = arith.constant 0 : index
    %56 = vector.load %arg9[%c0_33, %c0_34] : memref<144x256xf32, #tpu.memory_space<vmem>>, vector<16x256xf32>
    tpu.vector_store %arg9[%c0_33, %c0_34], %55 {strides = array<i32>} : memref<144x256xf32, #tpu.memory_space<vmem>>, vector<16x256xf32>,
    %c16_i32_35 = arith.constant 16 : i32
    %57 = tpu.dynamic_rotate %51 by %c16_i32_35 dim 1 : vector<16x256xf32>, i32 -> vector<16x256xf32>
    %c1_36 = arith.constant 1 : index
    %c0_37 = arith.constant 0 : index
    %58 = vector.load %arg6[%c1_36, %c0_37] : memref<9x256xf32, #tpu.memory_space<vmem>>, vector<1x256xf32>
    %59 = vector.broadcast %58 : vector<1x256xf32> to vector<16x256xf32>
    %60 = arith.mulf %57, %59 : vector<16x256xf32>
    %c16_38 = arith.constant 16 : index
    %c0_39 = arith.constant 0 : index
    %61 = vector.load %arg9[%c16_38, %c0_39] : memref<144x256xf32, #tpu.memory_space<vmem>>, vector<16x256xf32>
    tpu.vector_store %arg9[%c16_38, %c0_39], %60 {strides = array<i32>} : memref<144x256xf32, #tpu.memory_space<vmem>>, vector<16x256xf32>,
    %c15_i32_40 = arith.constant 15 : i32
    %62 = tpu.dynamic_rotate %51 by %c15_i32_40 dim 1 : vector<16x256xf32>, i32 -> vector<16x256xf32>
    %c2_41 = arith.constant 2 : index
    %c0_42 = arith.constant 0 : index
    %63 = vector.load %arg6[%c2_41, %c0_42] : memref<9x256xf32, #tpu.memory_space<vmem>>, vector<1x256xf32>
    %64 = vector.broadcast %63 : vector<1x256xf32> to vector<16x256xf32>
    %65 = arith.mulf %62, %64 : vector<16x256xf32>
    %c32_43 = arith.constant 32 : index
    %c0_44 = arith.constant 0 : index
    %66 = vector.load %arg9[%c32_43, %c0_44] : memref<144x256xf32, #tpu.memory_space<vmem>>, vector<16x256xf32>
    tpu.vector_store %arg9[%c32_43, %c0_44], %65 {strides = array<i32>} : memref<144x256xf32, #tpu.memory_space<vmem>>, vector<16x256xf32>,
    %c1_i32_45 = arith.constant 1 : i32
    %67 = tpu.dynamic_rotate %51 by %c1_i32_45 dim 1 : vector<16x256xf32>, i32 -> vector<16x256xf32>
    %c3_46 = arith.constant 3 : index
    %c0_47 = arith.constant 0 : index
    %68 = vector.load %arg6[%c3_46, %c0_47] : memref<9x256xf32, #tpu.memory_space<vmem>>, vector<1x256xf32>
    %69 = vector.broadcast %68 : vector<1x256xf32> to vector<16x256xf32>
    %70 = arith.mulf %67, %69 : vector<16x256xf32>
    %c48 = arith.constant 48 : index
    %c0_48 = arith.constant 0 : index
    %71 = vector.load %arg9[%c48, %c0_48] : memref<144x256xf32, #tpu.memory_space<vmem>>, vector<16x256xf32>
    tpu.vector_store %arg9[%c48, %c0_48], %70 {strides = array<i32>} : memref<144x256xf32, #tpu.memory_space<vmem>>, vector<16x256xf32>,
    %c4_49 = arith.constant 4 : index
    %c0_50 = arith.constant 0 : index
    %72 = vector.load %arg6[%c4_49, %c0_50] : memref<9x256xf32, #tpu.memory_space<vmem>>, vector<1x256xf32>
    %73 = vector.broadcast %72 : vector<1x256xf32> to vector<16x256xf32>
    %74 = arith.mulf %51, %73 : vector<16x256xf32>
    %c64 = arith.constant 64 : index
    %c0_51 = arith.constant 0 : index
    %75 = vector.load %arg9[%c64, %c0_51] : memref<144x256xf32, #tpu.memory_space<vmem>>, vector<16x256xf32>
    tpu.vector_store %arg9[%c64, %c0_51], %74 {strides = array<i32>} : memref<144x256xf32, #tpu.memory_space<vmem>>, vector<16x256xf32>,
    %c255_i32_52 = arith.constant 255 : i32
    %76 = tpu.dynamic_rotate %51 by %c255_i32_52 dim 1 : vector<16x256xf32>, i32 -> vector<16x256xf32>
    %c5_53 = arith.constant 5 : index
    %c0_54 = arith.constant 0 : index
    %77 = vector.load %arg6[%c5_53, %c0_54] : memref<9x256xf32, #tpu.memory_space<vmem>>, vector<1x256xf32>
    %78 = vector.broadcast %77 : vector<1x256xf32> to vector<16x256xf32>
    %79 = arith.mulf %76, %78 : vector<16x256xf32>
    %c80 = arith.constant 80 : index
    %c0_55 = arith.constant 0 : index
    %80 = vector.load %arg9[%c80, %c0_55] : memref<144x256xf32, #tpu.memory_space<vmem>>, vector<16x256xf32>
    tpu.vector_store %arg9[%c80, %c0_55], %79 {strides = array<i32>} : memref<144x256xf32, #tpu.memory_space<vmem>>, vector<16x256xf32>,
    %c241_i32_56 = arith.constant 241 : i32
    %81 = tpu.dynamic_rotate %51 by %c241_i32_56 dim 1 : vector<16x256xf32>, i32 -> vector<16x256xf32>
    %c6_57 = arith.constant 6 : index
    %c0_58 = arith.constant 0 : index
    %82 = vector.load %arg6[%c6_57, %c0_58] : memref<9x256xf32, #tpu.memory_space<vmem>>, vector<1x256xf32>
    %83 = vector.broadcast %82 : vector<1x256xf32> to vector<16x256xf32>
    %84 = arith.mulf %81, %83 : vector<16x256xf32>
    %c96 = arith.constant 96 : index
    %c0_59 = arith.constant 0 : index
    %85 = vector.load %arg9[%c96, %c0_59] : memref<144x256xf32, #tpu.memory_space<vmem>>, vector<16x256xf32>
    tpu.vector_store %arg9[%c96, %c0_59], %84 {strides = array<i32>} : memref<144x256xf32, #tpu.memory_space<vmem>>, vector<16x256xf32>,
    %c240_i32_60 = arith.constant 240 : i32
    %86 = tpu.dynamic_rotate %51 by %c240_i32_60 dim 1 : vector<16x256xf32>, i32 -> vector<16x256xf32>
    %c7_61 = arith.constant 7 : index
    %c0_62 = arith.constant 0 : index
    %87 = vector.load %arg6[%c7_61, %c0_62] : memref<9x256xf32, #tpu.memory_space<vmem>>, vector<1x256xf32>
    %88 = vector.broadcast %87 : vector<1x256xf32> to vector<16x256xf32>
    %89 = arith.mulf %86, %88 : vector<16x256xf32>
    %c112 = arith.constant 112 : index
    %c0_63 = arith.constant 0 : index
    %90 = vector.load %arg9[%c112, %c0_63] : memref<144x256xf32, #tpu.memory_space<vmem>>, vector<16x256xf32>
    tpu.vector_store %arg9[%c112, %c0_63], %89 {strides = array<i32>} : memref<144x256xf32, #tpu.memory_space<vmem>>, vector<16x256xf32>,
    %c239_i32_64 = arith.constant 239 : i32
    %91 = tpu.dynamic_rotate %51 by %c239_i32_64 dim 1 : vector<16x256xf32>, i32 -> vector<16x256xf32>
    %c8_65 = arith.constant 8 : index
    %c0_66 = arith.constant 0 : index
    %92 = vector.load %arg6[%c8_65, %c0_66] : memref<9x256xf32, #tpu.memory_space<vmem>>, vector<1x256xf32>
    %93 = vector.broadcast %92 : vector<1x256xf32> to vector<16x256xf32>
    %94 = arith.mulf %91, %93 : vector<16x256xf32>
    %c128 = arith.constant 128 : index
    %c0_67 = arith.constant 0 : index
    %95 = vector.load %arg9[%c128, %c0_67] : memref<144x256xf32, #tpu.memory_space<vmem>>, vector<16x256xf32>
    tpu.vector_store %arg9[%c128, %c0_67], %94 {strides = array<i32>} : memref<144x256xf32, #tpu.memory_space<vmem>>, vector<16x256xf32>,
    %c0_68 = arith.constant 0 : index
    %c0_69 = arith.constant 0 : index
    %96 = vector.load %arg4[%c0_68, %c0_69] : memref<12x144xf32, #tpu.memory_space<vmem>>, vector<12x144xf32>
    %c0_70 = arith.constant 0 : index
    %c0_71 = arith.constant 0 : index
    %97 = vector.load %arg9[%c0_70, %c0_71] : memref<144x256xf32, #tpu.memory_space<vmem>>, vector<144x256xf32>
    %cst_72 = arith.constant dense<0.000000e+00> : vector<12x256xf32>
    %98 = tpu.matmul %96, %97, %cst_72 {dimension_numbers = #tpu.dot_dimension_numbers<[1], [0], [0], [1], [0, 0, 1, 1], [], []>} : vector<12x144xf32>, vector<144x256xf32>, vector<12x256xf32> -> vector<12x256xf32>
    %c0_73 = arith.constant 0 : index
    %c0_74 = arith.constant 0 : index
    %99 = vector.load %arg5[%c0_73, %c0_74] : memref<12x1xf32, #tpu.memory_space<vmem>>, vector<12x1xf32>
    %100 = vector.broadcast %99 : vector<12x1xf32> to vector<12x256xf32>
    %101 = arith.addf %98, %100 : vector<12x256xf32>
    %c0_75 = arith.constant 0 : index
    %c0_76 = arith.constant 0 : index
    %c0_77 = arith.constant 0 : index
    %102 = vector.load %arg7[%c0_75, %c0_76, %c0_77] : memref<1x12x256xf32, #tpu.memory_space<vmem>>, vector<1x12x256xf32>
    %103 = vector.shape_cast %102 : vector<1x12x256xf32> to vector<12x256xf32>
    %104 = vector.shape_cast %101 : vector<12x256xf32> to vector<1x12x256xf32>
    tpu.vector_store %arg7[%c0_75, %c0_76, %c0_77], %104 {strides = array<i32>} : memref<1x12x256xf32, #tpu.memory_space<vmem>>, vector<1x12x256xf32>,
    return
  }
  func.func @transform_0(%arg0: i32) -> (i32, i32, i32) {
    %c0_i32 = arith.constant 0 : i32
    %c0_i32_0 = arith.constant 0 : i32
    %c0_i32_1 = arith.constant 0 : i32
    return %arg0, %c0_i32, %c0_i32_0 : i32, i32, i32
  }
  func.func @transform_1(%arg0: i32) -> (i32, i32) {
    %c0_i32 = arith.constant 0 : i32
    %c0_i32_0 = arith.constant 0 : i32
    %c0_i32_1 = arith.constant 0 : i32
    return %c0_i32, %c0_i32_0 : i32, i32
  }
  func.func @transform_2(%arg0: i32) -> (i32, i32) {
    %c0_i32 = arith.constant 0 : i32
    %c0_i32_0 = arith.constant 0 : i32
    %c0_i32_1 = arith.constant 0 : i32
    return %c0_i32, %c0_i32_0 : i32, i32
  }
  func.func @transform_3(%arg0: i32) -> (i32, i32) {
    %c0_i32 = arith.constant 0 : i32
    %c0_i32_0 = arith.constant 0 : i32
    %c0_i32_1 = arith.constant 0 : i32
    return %c0_i32, %c0_i32_0 : i32, i32
  }
  func.func @transform_4(%arg0: i32) -> (i32, i32) {
    %c0_i32 = arith.constant 0 : i32
    %c0_i32_0 = arith.constant 0 : i32
    %c0_i32_1 = arith.constant 0 : i32
    return %c0_i32, %c0_i32_0 : i32, i32
  }
  func.func @transform_5(%arg0: i32) -> (i32, i32) {
    %c0_i32 = arith.constant 0 : i32
    %c0_i32_0 = arith.constant 0 : i32
    %c0_i32_1 = arith.constant 0 : i32
    return %c0_i32, %c0_i32_0 : i32, i32
  }
  func.func @transform_6(%arg0: i32) -> (i32, i32, i32) {
    %c0_i32 = arith.constant 0 : i32
    %c0_i32_0 = arith.constant 0 : i32
    %c0_i32_1 = arith.constant 0 : i32
    return %arg0, %c0_i32, %c0_i32_0 : i32, i32, i32
  }
}

</mosaic_0001>

<bundles_post_ra>
// kernel: tile.0
= control target key start
LH: loop header
LB: loop body
LE: loop exit
PB: predicated region body
PF: predicated region fallthrough
CT: control target
= control target key end

     0   :  { %vm8_vm0 = vcmask 7168   ;;  %s27_s10 = smov 126   ;;  %s50_s0 = inlined_call_operand.vmem [shape: f32[4,3], index: 0, kind: input, shape index: {}]   ;;  %s51_s1 = inlined_call_operand.vmem [shape: f32[12,1], index: 1, kind: output, shape index: {}]  }
   0x1   :  { %v5_v0 = vld [vmem:[%s50_s0] sm:$0xf]  ;;  %s26_s0 = smov 127  }
   0x2   :  { %6 = vst [vmem:[#allocation0] sm:$0xf] %v5_v0 }
   0x9   :  { %v10_v1 = vld [vmem:[#allocation0] sm:$0xf]  }
   0xa   :  { %v7_v2 = vld [vmem:[#allocation0] sm:$0xf]   ;;  %11 = vrot.lane.b32.xlu0 %v10_v1, %s26_s0 }
   0xb   :  { %9 = vst.msk [vmem:[%s51_s1] ss:$3 sm:$0xf] %vm8_vm0, %v7_v2   ;;  %v16_v3 = vld [vmem:[#allocation0] sm:$0xf]  }
   0xe   :  { %17 = vrot.lane.b32.xlu0 %v16_v3, %s27_s10 }
  0x7c   :  { %v12_v4 = vpop.permute.xlu0 %11  }
  0x7d   :  { %22 = vst.msk [vmem:[%s51_s1 + $0x1] ss:$3 sm:$0xf] %vm8_vm0, %v12_v4  }
  0x80   :  { %v18_v5 = vpop.permute.xlu0 %17  }
  0x81   :  { %23 = vst.msk [vmem:[%s51_s1 + $0x2] ss:$3 sm:$0xf] %vm8_vm0, %v18_v5  }

// kernel: tile.8
= control target key start
LH: loop header
LB: loop body
LE: loop exit
PB: predicated region body
PF: predicated region fallthrough
CT: control target
= control target key end

     0   :  { %2 = vsyncpa [#allocation1], 0  ;;  %s42_s6 = smov [#allocation0]   ;;  %s59_s0 = inlined_call_operand.hbm [shape: f32[3], index: 0, kind: input, shape index: {}]   ;;  %s60_s1 = inlined_call_operand.vmem [shape: f32[4,3], index: 1, kind: output, shape index: {}]  }
   0x1   :  { %s9_s7 = sshll.u32 %s42_s6, 4  ;;  %s10_s7 = int_to_ptr.vmem [resolvable:$true] %s9_s7 }
   0x2   :  { %s28_s8 = scalar_lea.vmem %s10_s7, 16  ;;  %s32_s9 = scalar_lea.vmem %s10_s7, 32 }
   0x3   :  { %p29_p0 = scmp.ne.s32.totalorder %s10_s7, %s28_s8  ;;  %p33_p1 = scmp.lt.s32.totalorder %s10_s7, %s10_s7 }
   0x4   :  { %p34_p2 = scmp.lt.s32.totalorder %s32_s9, %s28_s8 }
   0x6   :  { %p35_p3 = por %p34_p2, %p33_p1 }
   0x8   :  { %p36_p4 = pnand %p35_p3, %p29_p0 }
   0xa   :  { %39 = shalt.err (!%p36_p4)
}
   0xb   :  { %12 = dma.hbm_to_vmem [thread:$0]  %s59_s0, 16, %s10_s7, [#allocation1]  }
   0xc   :  { %40 = dma.done.wait [#allocation1], 16  }
   0xd   :  { %41 = vsyncadd [#allocation1], 4294967280  ;;  %v16_v0 = vld [vmem:[#allocation0] ss:$0 sm:$0xff] }
   0xe   :  { %17 = vst [vmem:[%s60_s1] sm:$0xf] %v16_v0 }
   0xf   :  { %18 = vsyncpa [#allocation1], 1 }

// kernel: upsampler_forward.1
= control target key start
LH: loop header
LB: loop body
LE: loop exit
PB: predicated region body
PF: predicated region fallthrough
CT: control target
= control target key end

     0   :  { %s1187_s21 = smov 0   ;;  %s1568_s0 = inlined_call_operand.vmem [shape: f32[2,4,256], index: 0, kind: input, shape index: {}]   ;;  %s1569_s1 = inlined_call_operand.vmem [shape: f32[16,36], index: 1, kind: input, shape index: {}]   ;;  %s1570_s2 = inlined_call_operand.vmem [shape: f32[16,1], index: 2, kind: input, shape index: {}]   ;;  %s1571_s3 = inlined_call_operand.vmem [shape: f32[12,144], index: 3, kind: input, shape index: {}]   ;;  %s1572_s4 = inlined_call_operand.vmem [shape: f32[12,1], index: 4, kind: input, shape index: {}]   ;;  %s1573_s5 = inlined_call_operand.vmem [shape: f32[9,256], index: 5, kind: input, shape index: {}]   ;;  %s1574_s6 = inlined_call_operand.vmem [shape: f32[2,12,256], index: 6, kind: output, shape index: {}]  }
   0x1 LB: > { %s1078_s22 = sadd.s32 4294967295, %s1140_s21   ;;  %p1082_p0 = scmp.ge.s32.totalorder %s1140_s21, 1  ;;  %s1140_s21 = sphi %s1187_s21, %s16_s21  }
   0x2   : > { %p212_p1 = scmp.lt.s32.totalorder %s1140_s21, 3 }
   0x4   : > { %p213_p2 = pnand %p1082_p0, %p212_p1 }
   0x5   : > { %p242_p3 = scmp.lt.s32.totalorder (!%p213_p2), %s1078_s22, 1  ;;  %s1142_s29 = smov (!%p213_p2), 111  }
   0x6   : > { %216 = sbr.rel (%p213_p2) target bundleno = 750 (0x2ee), region = 44  ;;  %s1143_s30 = smov (!%p213_p2), 112  }
   0x7   : > { %s1144_s7 = smov (!%p213_p2), 127   ;;  %s1145_s8 = smov (!%p213_p2), 113  }
   0x8   : > { %s1146_s9 = smov (!%p213_p2), 1   ;;  %s1147_s10 = smov (!%p213_p2), 16  }
   0x9   : > { %s1148_s11 = smov (!%p213_p2), 15   ;;  %s1150_s12 = smov (!%p213_p2), 17  }
   0xb   : > { %v260_v0 = vlaneseq  ;;  %s1576_s22 = smov (!%p242_p3, %s1078_s22), 1  ;;  %v1090_v2 = vld [vmem:[%s1573_s5 + $0x4] ss:$8 sm:$0x3]  ;;  %v1149_v12 = vmov 0.0   ;;  %v1151_v15 = vmov 0  }
   0xc   : > { %s1111_s23 = sshll.u32 %s1576_s22, 3  ;;  %594 = vmatprep.mubr.f32.mxu0 %v1149_v12  ;;  %v504_v13 = vld [vmem:[%s1570_s2] sm:$0xff]  ;;  %v505_v14 = vld [vmem:[%s1570_s2 + $0x8] sm:$0xff]  ;;  %1132 = vset.pattern.permute.xlu1 %v1151_v15  ;;  %v1094_v17 = vld [vmem:[%s1573_s5 + $0x10] ss:$8 sm:$0x3] }
   0xd   : > { %v268_v1 = vshrl.u32 %v260_v0, 7  ;;  %s246_s26 = scalar_lea.vmem %s1568_s0, %s1111_s23  ;;  %1131 = vset.pattern.permute.xlu0 %v1151_v15  ;;  %v1233_v16 = vand.u32 127, %v260_v0  ;;  %v1091_v22 = vld [vmem:[%s1573_s5 + $0x5] ss:$8 sm:$0x3]  ;;  %vm523_vm4 = vcmask 1043456  }
   0xe   : > { %v252_v3 = vld [vmem:[%s246_s26] sm:$0xff]  ;;  %vm516_vm9 = vcmask 293888   ;;  %vm935_vm10 = vcmask 130048   ;;  %s1112_s25 = sshll.u32 %s1576_s22, 5 }
   0xf   : > { %v1204_v4 = vsub.s32 0, %v268_v1  ;;  %468 = vrot.lane.b32.xlu1 %v252_v3, %s1142_s29  ;;  %438 = vrot.lane.b32.xlu0 %v252_v3, %s1143_s30  ;;  %v254_v5 = vcombine.high %v252_v3, %v252_v3  ;;  %v1208_v6 = vsub.s32 1, %v268_v1  ;;  %vm472_vm0 = vcmp.lt.s32.totalorder %v1233_v16, 111  ;;  %v1093_v23 = vld [vmem:[%s1573_s5 + $0x7] ss:$8 sm:$0x3]  ;;  %s251_s28 = scalar_lea.vmem %s1574_s6, %s1112_s25 }
  0x10   : > { %vm388_vm1 = vcmp.lt.s32.totalorder %v1233_v16, 127  ;;  %vm442_vm2 = vcmp.lt.s32.totalorder %v1233_v16, 112  ;;  %v1092_v30 = vld [vmem:[%s1573_s5 + $0x6] ss:$8 sm:$0x3]  ;;  %vm418_vm3 = vcmp.lt.s32.totalorder %v1233_v16, 113 }
  0x11   : > { %v371_v7 = vrot.slane %v1090_v2, %v1204_v4  ;;  %v375_v8 = vrot.slane %v1090_v2, %v1208_v6  ;;  %v481_v20 = vrot.slane %v1094_v17, %v1204_v4  ;;  %v485_v21 = vrot.slane %v1094_v17, %v1208_v6  ;;  %v1089_v47 = vld [vmem:[%s1573_s5 + $0x3] ss:$8 sm:$0x3]  ;;  %v1087_v60 = vld [vmem:[%s1573_s5 + $0x1] ss:$8 sm:$0x3] }
  0x12   : > { %v397_v28 = vrot.slane %v1091_v22, %v1204_v4  ;;  %v401_v29 = vrot.slane %v1091_v22, %v1208_v6  ;;  %v451_v33 = vrot.slane %v1093_v23, %v1204_v4  ;;  %v455_v34 = vrot.slane %v1093_v23, %v1208_v6 }
  0x13   : > { %384 = vrot.lane.b32.xlu0 %v252_v3, %s1144_s7  ;;  %470 = vrot.lane.b32.xlu1 %v254_v5, %s1142_s29  ;;  %v376_v9 = vcombine.low %v371_v7, %v375_v8  ;;  %v427_v37 = vrot.slane %v1092_v30, %v1204_v4  ;;  %v431_v38 = vrot.slane %v1092_v30, %v1208_v6  ;;  %vm339_vm5 = vcmp.lt.s32.totalorder %v1233_v16, 1 }
  0x14   : > { %v348_v58 = vrot.slane %v1089_v47, %v1204_v4  ;;  %v352_v59 = vrot.slane %v1089_v47, %v1208_v6  ;;  %vm285_vm6 = vcmp.lt.s32.totalorder %v1233_v16, 16  ;;  %v294_v7 = vrot.slane %v1087_v60, %v1204_v4  ;;  %v492_v47 = vld [vmem:[%s1569_s1] sm:$0xff] }
  0x15   : > { %v378_v10 = vmul.f32 %v376_v9, %v252_v3  ;;  %v298_v8 = vrot.slane %v1087_v60, %v1208_v6  ;;  %v1088_v9 = vld [vmem:[%s1573_s5 + $0x2] ss:$8 sm:$0x3]  ;;  %vm315_vm7 = vcmp.lt.s32.totalorder %v1233_v16, 15  ;;  %vm262_vm8 = vcmp.lt.s32.totalorder %v1233_v16, 17 }
  0x16   : > { %v924_v60 = vld [vmem:[%s1572_s4 + $0x8] sm:$0xf]  ;;  %v885_v16 = vld [vmem:[%s1571_s3 + $0x10] sm:$0xf] }
  0x17   : > { %386 = vrot.lane.b32.xlu1 %v254_v5, %s1144_s7  ;;  %440 = vrot.lane.b32.xlu0 %v254_v5, %s1143_s30  ;;  %v380_v11 = vcombine.high %v378_v10, %v378_v10  ;;  %382 = vst [vmem:[#allocation2 + $0x48] sm:$0xf] %v378_v10 }
  0x19   : > { %383 = vst [vmem:[#allocation2 + $0x28] sm:$0xf] %v380_v11 }
  0x1b   : > { %416 = vrot.lane.b32.xlu1 %v254_v5, %s1145_s8  ;;  %414 = vrot.lane.b32.xlu0 %v252_v3, %s1145_s8 }
  0x1f   : > { %337 = vrot.lane.b32.xlu1 %v254_v5, %s1146_s9  ;;  %335 = vrot.lane.b32.xlu0 %v252_v3, %s1146_s9 }
  0x23   : > { %283 = vrot.lane.b32.xlu1 %v254_v5, %s1147_s10  ;;  %281 = vrot.lane.b32.xlu0 %v252_v3, %s1147_s10 }
  0x27   : > { %313 = vrot.lane.b32.xlu1 %v254_v5, %s1148_s11  ;;  %311 = vrot.lane.b32.xlu0 %v252_v3, %s1148_s11 }
  0x2b   : > { %258 = vrot.lane.b32.xlu1 %v254_v5, %s1150_s12  ;;  %256 = vrot.lane.b32.xlu0 %v252_v3, %s1150_s12 }
  0x2f   : > { %508 = vperm.xlu1 %1132, %v504_v13   ;;  %513 = vperm.xlu0 %1131, %v505_v14  }
  0x81   : > { %v469_v18 = vpop.permute.xlu1 %468  ;;  %v439_v19 = vpop.permute.xlu0 %438 }
  0x85   : > { %v385_v24 = vpop.permute.xlu0 %384  ;;  %v471_v25 = vpop.permute.xlu1 %470 }
  0x86   : > { %v473_v26 = vsel %vm472_vm0, %v469_v18, %v471_v25  ;;  %v474_v27 = vsel %vm472_vm0, %v471_v25, %v469_v18 }
  0x87   : > { %v488_v31 = vmul.f32 %v481_v20, %v473_v26  ;;  %v489_v32 = vmul.f32 %v485_v21, %v474_v27  ;;  %v324_v20 = vrot.slane %v1088_v9, %v1204_v4  ;;  %v328_v21 = vrot.slane %v1088_v9, %v1208_v6 }
  0x89   : > { %490 = vst [vmem:[#allocation2 + $0x40] sm:$0xf] %v488_v31  ;;  %491 = vst [vmem:[#allocation2 + $0x38] sm:$0xf] %v489_v32  ;;  %v387_v35 = vpop.permute.xlu1 %386  ;;  %v441_v36 = vpop.permute.xlu0 %440 }
  0x8a   : > { %v389_v39 = vsel %vm388_vm1, %v385_v24, %v387_v35  ;;  %v390_v40 = vsel %vm388_vm1, %v387_v35, %v385_v24  ;;  %v443_v41 = vsel %vm442_vm2, %v439_v19, %v441_v36  ;;  %v444_v42 = vsel %vm442_vm2, %v441_v36, %v439_v19  ;;  %v265_v24 = vld [vmem:[%s1573_s5] ss:$8 sm:$0x3] }
  0x8b   : > { %v404_v43 = vmul.f32 %v397_v28, %v389_v39  ;;  %v405_v44 = vmul.f32 %v401_v29, %v390_v40  ;;  %v458_v45 = vmul.f32 %v451_v33, %v443_v41  ;;  %v459_v46 = vmul.f32 %v455_v34, %v444_v42 }
  0x8c   : > { %v270_v35 = vrot.slane %v265_v24, %v1204_v4  ;;  %v274_v36 = vrot.slane %v265_v24, %v1208_v6 }
  0x8d   : > { %v408_v48 = vrot.slane %v404_v43, 4  ;;  %v409_v49 = vrot.slane %v405_v44, 4  ;;  %v462_v50 = vrot.slane %v458_v45, 4  ;;  %v463_v51 = vrot.slane %v459_v46, 4  ;;  %v417_v52 = vpop.permute.xlu1 %416  ;;  %v415_v53 = vpop.permute.xlu0 %414 }
  0x8e   : > { %v419_v54 = vsel %vm418_vm3, %v415_v53, %v417_v52  ;;  %v420_v55 = vsel %vm418_vm3, %v417_v52, %v415_v53 }
  0x8f   : > { %412 = vst [vmem:[#allocation2 + $0x48] sm:$0xf0] %v408_v48  ;;  %413 = vst [vmem:[#allocation2 + $0x28] sm:$0xf0] %v409_v49  ;;  %v434_v56 = vmul.f32 %v427_v37, %v419_v54  ;;  %v435_v57 = vmul.f32 %v431_v38, %v420_v55  ;;  %v493_v48 = vld [vmem:[%s1569_s1 + $0x8] sm:$0xff] }
  0x90   : > { %466 = vst [vmem:[#allocation2 + $0x8] sm:$0xf0] %v462_v50  ;;  %467 = vst [vmem:[#allocation2 + $0x20] sm:$0xf0] %v463_v51  ;;  %v503_v61 = vld [vmem:[#allocation2 + $0x38] sm:$0xf] }
  0x91   : > { %v502_v62 = vld [vmem:[#allocation2 + $0x40] sm:$0xf]  ;;  %436 = vst [vmem:[#allocation2 + $0x8] sm:$0xf] %v434_v56  ;;  %437 = vst [vmem:[#allocation2 + $0x20] sm:$0xf] %v435_v57  ;;  %1095 = vmatprep.subr.msk.mxu0 %vm523_vm4, %v503_v61  ;;  %v338_v63 = vpop.permute.xlu1 %337  ;;  %v336_v0 = vpop.permute.xlu0 %335 }
  0x92   : > { %v340_v1 = vsel %vm339_vm5, %v336_v0, %v338_v63  ;;  %v341_v2 = vsel %vm339_vm5, %v338_v63, %v336_v0  ;;  %1096 = vmatpush1.msk.msra.mxu0 %vm523_vm4, %v502_v62 }
  0x93   : > { %v355_v3 = vmul.f32 %v348_v58, %v341_v2  ;;  %v356_v5 = vmul.f32 %v352_v59, %v340_v1  ;;  %v884_v58 = vld [vmem:[%s1571_s3 + $0x8] sm:$0xff]  ;;  %v923_v59 = vld [vmem:[%s1572_s4] sm:$0xff] }
  0x94   : > { %1107 = vmatprep.mubr.msk.f32.mxu1 %vm935_vm10, %v884_v58 }
  0x95   : > { %v359_v10 = vrot.slane %v355_v3, 4  ;;  %v360_v11 = vrot.slane %v356_v5, 4  ;;  %v284_v13 = vpop.permute.xlu1 %283  ;;  %v282_v14 = vpop.permute.xlu0 %281 }
  0x96   : > { %v286_v15 = vsel %vm285_vm6, %v282_v14, %v284_v13  ;;  %v287_v17 = vsel %vm285_vm6, %v284_v13, %v282_v14  ;;  %v499_v31 = vld [vmem:[#allocation2 + $0x28] sm:$0xff] }
  0x97   : > { %363 = vst [vmem:[#allocation2 + $0x18] sm:$0xf0] %v359_v10  ;;  %364 = vst [vmem:[#allocation2 + $0x10] sm:$0xf0] %v360_v11  ;;  %v301_v18 = vmul.f32 %v294_v7, %v287_v17  ;;  %v302_v19 = vmul.f32 %v298_v8, %v286_v15  ;;  %v498_v34 = vld [vmem:[#allocation2 + $0x48] sm:$0xff] }
  0x98   : > { %v501_v22 = vld [vmem:[#allocation2 + $0x20] sm:$0xff]  ;;  %v500_v23 = vld [vmem:[#allocation2 + $0x8] sm:$0xff] }
  0x99   : > { %v305_v25 = vrot.slane %v301_v18, 4  ;;  %v306_v26 = vrot.slane %v302_v19, 4  ;;  %v314_v27 = vpop.permute.xlu1 %313  ;;  %554 = vmatprep.subr.mxu0 %v501_v22  ;;  %v312_v28 = vpop.permute.xlu0 %311  ;;  %v1105_v11 = vld [vmem:[%s1573_s5 + $0x7] ss:$8 sm:$0x3] }
  0x9a   : > { %v316_v29 = vsel %vm315_vm7, %v312_v28, %v314_v27  ;;  %v317_v30 = vsel %vm315_vm7, %v314_v27, %v312_v28  ;;  %555 = vmatpush1.msra.mxu0 %v500_v23  ;;  %v836_v14 = vrot.slane %v1105_v11, %v1204_v4  ;;  %v840_v17 = vrot.slane %v1105_v11, %v1208_v6  ;;  %v1104_v19 = vld [vmem:[%s1573_s5 + $0x6] ss:$8 sm:$0x3] }
  0x9b   : > { %309 = vst [vmem:[#allocation2 + $0x30] sm:$0xf0] %v305_v25  ;;  %310 = vst [vmem:[#allocation2] sm:$0xf0] %v306_v26  ;;  %v331_v32 = vmul.f32 %v324_v20, %v317_v30  ;;  %v332_v33 = vmul.f32 %v328_v21, %v316_v29  ;;  %556 = vmatprep.subr.mxu0 %v499_v31  ;;  %v804_v26 = vrot.slane %v1104_v19, %v1204_v4 }
  0x9c   : > { %557 = vmatpush1.msra.mxu0 %v498_v34  ;;  %v808_v27 = vrot.slane %v1104_v19, %v1208_v6 }
  0x9d   : > { %333 = vst [vmem:[#allocation2 + $0x18] sm:$0xf] %v331_v32  ;;  %334 = vst [vmem:[#allocation2 + $0x10] sm:$0xf] %v332_v33  ;;  %v259_v37 = vpop.permute.xlu1 %258  ;;  %v257_v38 = vpop.permute.xlu0 %256 }
  0x9e   : > { %v263_v39 = vsel %vm262_vm8, %v257_v38, %v259_v37  ;;  %v264_v40 = vsel %vm262_vm8, %v259_v37, %v257_v38  ;;  %v1103_v32 = vld [vmem:[%s1573_s5 + $0x5] ss:$8 sm:$0x3] }
  0x9f   : > { %v277_v41 = vmul.f32 %v270_v35, %v264_v40  ;;  %v278_v42 = vmul.f32 %v274_v36, %v263_v39  ;;  %v772_v40 = vrot.slane %v1103_v32, %v1204_v4 }
  0xa1   : > { %279 = vst [vmem:[#allocation2 + $0x30] sm:$0xf] %v277_v41  ;;  %280 = vst [vmem:[#allocation2] sm:$0xf] %v278_v42  ;;  %v776_v41 = vrot.slane %v1103_v32, %v1208_v6 }
  0xa4   : > { %v497_v43 = vld [vmem:[#allocation2 + $0x10] sm:$0xff]  ;;  %v496_v44 = vld [vmem:[#allocation2 + $0x18] sm:$0xff] }
  0xa5   : > { %558 = vmatprep.subr.mxu0 %v497_v43 }
  0xa6   : > { %559 = vmatpush1.msra.mxu0 %v496_v44 }
  0xa8   : > { %v495_v45 = vld [vmem:[#allocation2] sm:$0xff]  ;;  %v494_v46 = vld [vmem:[#allocation2 + $0x30] sm:$0xff] }
  0xa9   : > { %560 = vmatprep.subr.mxu0 %v495_v45 }
  0xaa   : > { %561 = vmatpush1.msra.mxu0 %v494_v46  ;;  %v509_v49 = vpop.permute.xlu1 %508  ;;  %v514_v54 = vpop.permute.xlu0 %513 }
  0xab   : > { %1097 = vmatmul.mubr.msk.f32.vlgmr.msra.gmra.mxu0 %vm516_vm9, %v492_v47 }
  0xac   : > { %600 = vmatprep.mubr.f32.mxu0 %v1149_v12 }
  0xaf   : > { %1098 = vmatmul.mubr.msk.f32.gmra.mxu0 %vm516_vm9, %v493_v48 }
 0x16b   : > { %v596_v50 = vpop.f32.mrf.mxu0 }
 0x16c   : > { %v1324_v51 = vadd.f32 %v596_v50, %v509_v49 }
 0x16d   : > { %v598_v52 = vpop.f32.mrf.mxu0 }
 0x16e   : > { %v1326_v53 = vadd.f32 %v598_v52, %v509_v49  ;;  %819 = vrot.lane.b32.xlu1 %v1324_v51, %s1143_s30  ;;  %v1102_v52 = vld [vmem:[%s1573_s5 + $0x4] ss:$8 sm:$0x3] }
 0x16f   : > { %v602_v12 = vpop.f32.mrf.mxu0 }
 0x170   : > { %823 = vrot.lane.b32.xlu0 %v1326_v53, %s1143_s30  ;;  %v1350_v55 = vadd.f32 %v602_v12, %v514_v54 }
 0x171   : > { %v604_v56 = vpop.f32.mrf.mxu0 }
 0x172   : > { %787 = vrot.lane.b32.xlu1 %v1324_v51, %s1145_s8  ;;  %v1354_v57 = vadd.f32 %v604_v56, %v514_v54  ;;  %v744_v56 = vrot.slane %v1102_v52, %v1208_v6 }
 0x174   : > { %791 = vrot.lane.b32.xlu0 %v1326_v53, %s1145_s8  ;;  %v748_v11 = vmul.f32 %v744_v56, %v1326_v53 }
 0x176   : > { %755 = vrot.lane.b32.xlu1 %v1324_v51, %s1144_s7 }
 0x178   : > { %759 = vrot.lane.b32.xlu0 %v1326_v53, %s1144_s7 }
 0x17a   : > { %703 = vrot.lane.b32.xlu1 %v1324_v51, %s1146_s9 }
 0x17c   : > { %707 = vrot.lane.b32.xlu0 %v1326_v53, %s1146_s9 }
 0x17e   : > { %671 = vrot.lane.b32.xlu1 %v1324_v51, %s1148_s11 }
 0x180   : > { %675 = vrot.lane.b32.xlu0 %v1326_v53, %s1148_s11 }
 0x182   : > { %639 = vrot.lane.b32.xlu1 %v1324_v51, %s1147_s10 }
 0x184   : > { %643 = vrot.lane.b32.xlu0 %v1326_v53, %s1147_s10 }
 0x186   : > { %821 = vrot.lane.b32.xlu1 %v1350_v55, %s1143_s30 }
 0x188   : > { %825 = vrot.lane.b32.xlu0 %v1354_v57, %s1143_s30 }
 0x18a   : > { %789 = vrot.lane.b32.xlu1 %v1350_v55, %s1145_s8 }
 0x18c   : > { %793 = vrot.lane.b32.xlu0 %v1354_v57, %s1145_s8 }
 0x18e   : > { %757 = vrot.lane.b32.xlu1 %v1350_v55, %s1144_s7 }
 0x190   : > { %761 = vrot.lane.b32.xlu0 %v1354_v57, %s1144_s7 }
 0x192   : > { %607 = vrot.lane.b32.xlu1 %v1324_v51, %s1150_s12 }
 0x194   : > { %611 = vrot.lane.b32.xlu0 %v1326_v53, %s1150_s12 }
 0x196   : > { %705 = vrot.lane.b32.xlu1 %v1350_v55, %s1146_s9 }
 0x198   : > { %709 = vrot.lane.b32.xlu0 %v1354_v57, %s1146_s9 }
 0x19a   : > { %673 = vrot.lane.b32.xlu1 %v1350_v55, %s1148_s11 }
 0x19c   : > { %677 = vrot.lane.b32.xlu0 %v1354_v57, %s1148_s11 }
 0x19e   : > { %641 = vrot.lane.b32.xlu1 %v1350_v55, %s1147_s10 }
 0x1a0   : > { %645 = vrot.lane.b32.xlu0 %v1354_v57, %s1147_s10 }
 0x1a2   : > { %609 = vrot.lane.b32.xlu1 %v1350_v55, %s1150_s12 }
 0x1a4   : > { %613 = vrot.lane.b32.xlu0 %v1354_v57, %s1150_s12 }
 0x1a6   : > { %853 = vrot.lane.b32.xlu1 %v1350_v55, %s1142_s29 }
 0x1a8   : > { %857 = vrot.lane.b32.xlu0 %v1354_v57, %s1142_s29 }
 0x1aa   : > { %851 = vrot.lane.b32.xlu1 %v1324_v51, %s1142_s29 }
 0x1ac   : > { %855 = vrot.lane.b32.xlu0 %v1326_v53, %s1142_s29 }
 0x1ae   : > { %927 = vperm.xlu1 %1132, %v923_v59   ;;  %v1101_v59 = vld [vmem:[%s1573_s5 + $0x3] ss:$8 sm:$0x3] }
 0x1b0   : > { %932 = vperm.xlu0 %1131, %v924_v60   ;;  %v740_v60 = vrot.slane %v1102_v52, %v1204_v4 }
 0x1e0   : > { %v820_v61 = vpop.permute.xlu1 %819 }
 0x1e2   : > { %v824_v62 = vpop.permute.xlu0 %823 }
 0x1e3   : > { %v829_v18 = vsel %vm442_vm2, %v824_v62, %v820_v61  ;;  %v827_v22 = vsel %vm442_vm2, %v820_v61, %v824_v62  ;;  %v750_v62 = vmul.f32 %v744_v56, %v1354_v57  ;;  %v1100_v57 = vld [vmem:[%s1573_s5 + $0x2] ss:$8 sm:$0x3] }
 0x1e4   : > { %v788_v63 = vpop.permute.xlu1 %787  ;;  %v844_v29 = vmul.f32 %v840_v17, %v829_v18  ;;  %v843_v30 = vmul.f32 %v836_v14, %v827_v22  ;;  %v692_v22 = vrot.slane %v1100_v57, %v1208_v6 }
 0x1e6   : > { %v792_v0 = vpop.permute.xlu0 %791 }
 0x1e7   : > { %v797_v31 = vsel %vm418_vm3, %v792_v0, %v788_v63  ;;  %v795_v35 = vsel %vm418_vm3, %v788_v63, %v792_v0  ;;  %v749_v63 = vmul.f32 %v740_v60, %v1350_v55  ;;  %v720_v0 = vrot.slane %v1101_v59, %v1204_v4 }
 0x1e8   : > { %v756_v1 = vpop.permute.xlu1 %755  ;;  %v812_v39 = vmul.f32 %v808_v27, %v797_v31  ;;  %v811_v43 = vmul.f32 %v804_v26, %v795_v35 }
 0x1ea   : > { %v760_v2 = vpop.permute.xlu0 %759 }
 0x1eb   : > { %v765_v44 = vsel %vm388_vm1, %v760_v2, %v756_v1  ;;  %v763_v47 = vsel %vm388_vm1, %v756_v1, %v760_v2  ;;  %v724_v1 = vrot.slane %v1101_v59, %v1208_v6 }
 0x1ec   : > { %v1406_v3 = vpop.permute.xlu1 %703  ;;  %v780_v12 = vmul.f32 %v776_v41, %v765_v44  ;;  %v779_v58 = vmul.f32 %v772_v40, %v763_v47 }
 0x1ee   : > { %v1408_v5 = vpop.permute.xlu0 %707 }
 0x1ef   : > { %v713_v53 = vsel %vm339_vm5, %v1408_v5, %v1406_v3 }
 0x1f0   : > { %v1410_v7 = vpop.permute.xlu1 %671 }
 0x1f2   : > { %v1412_v8 = vpop.permute.xlu0 %675 }
 0x1f4   : > { %v1414_v9 = vpop.permute.xlu1 %639 }
 0x1f6   : > { %v1416_v10 = vpop.permute.xlu0 %643 }
 0x1f7   : > { %v647_v35 = vsel %vm285_vm6, %v1414_v9, %v1416_v10 }
 0x1f8   : > { %v822_v13 = vpop.permute.xlu1 %821 }
 0x1fa   : > { %v826_v15 = vpop.permute.xlu0 %825 }
 0x1fb   : > { %v828_v20 = vsel %vm442_vm2, %v822_v13, %v826_v15  ;;  %v830_v21 = vsel %vm442_vm2, %v826_v15, %v822_v13  ;;  %v711_v13 = vsel %vm339_vm5, %v1406_v3, %v1408_v5  ;;  %v747_v15 = vmul.f32 %v740_v60, %v1324_v51  ;;  %v1099_v3 = vld [vmem:[%s1573_s5 + $0x1] ss:$8 sm:$0x3] }
 0x1fc   : > { %v790_v23 = vpop.permute.xlu1 %789  ;;  %v846_v24 = vmul.f32 %v840_v17, %v830_v21  ;;  %v845_v25 = vmul.f32 %v836_v14, %v828_v20  ;;  %v728_v20 = vmul.f32 %v724_v1, %v711_v13  ;;  %v688_v21 = vrot.slane %v1100_v57, %v1204_v4  ;;  %v883_v13 = vld [vmem:[%s1571_s3] sm:$0xff]  ;;  %v886_v57 = vld [vmem:[%s1571_s3 + $0x18] sm:$0xf] }
 0x1fd   : > { %v679_v51 = vsel %vm315_vm7, %v1410_v7, %v1412_v8  ;;  %v656_v31 = vrot.slane %v1099_v3, %v1204_v4  ;;  %v660_v32 = vrot.slane %v1099_v3, %v1208_v6 }
 0x1fe   : > { %942 = vmatprep.subr.mxu1 %v846_v24  ;;  %v794_v28 = vpop.permute.xlu0 %793  ;;  %v727_v24 = vmul.f32 %v720_v0, %v713_v53 }
 0x1ff   : > { %v796_v33 = vsel %vm418_vm3, %v790_v23, %v794_v28  ;;  %v798_v34 = vsel %vm418_vm3, %v794_v28, %v790_v23  ;;  %943 = vmatpush1.msra.mxu1 %v845_v25 }
 0x200   : > { %v813_v36 = vmul.f32 %v804_v26, %v796_v33  ;;  %v814_v37 = vmul.f32 %v808_v27, %v798_v34  ;;  %v758_v38 = vpop.permute.xlu1 %757  ;;  %944 = vmatprep.subr.mxu1 %v844_v29  ;;  %v681_v26 = vsel %vm315_vm7, %v1412_v8, %v1410_v7  ;;  %v619_v7 = vld [vmem:[%s1573_s5] ss:$8 sm:$0x3] }
 0x201   : > { %945 = vmatpush1.msra.mxu1 %v843_v30  ;;  %v696_v30 = vmul.f32 %v692_v22, %v679_v51  ;;  %v695_v34 = vmul.f32 %v688_v21, %v681_v26  ;;  %v628_v44 = vrot.slane %v619_v7, %v1208_v6 }
 0x202   : > { %946 = vmatprep.subr.mxu1 %v814_v37  ;;  %v762_v42 = vpop.permute.xlu0 %761  ;;  %v1106_v37 = vld [vmem:[%s1573_s5 + $0x10] ss:$8 sm:$0x3] }
 0x203   : > { %v764_v45 = vsel %vm388_vm1, %v758_v38, %v762_v42  ;;  %v766_v46 = vsel %vm388_vm1, %v762_v42, %v758_v38  ;;  %947 = vmatpush1.msra.mxu1 %v813_v36  ;;  %v649_v38 = vsel %vm285_vm6, %v1416_v10, %v1414_v9  ;;  %v664_v42 = vmul.f32 %v660_v32, %v647_v35 }
 0x204   : > { %v781_v48 = vmul.f32 %v772_v40, %v764_v45  ;;  %v782_v49 = vmul.f32 %v776_v41, %v766_v46  ;;  %v1457_v50 = vpop.permute.xlu1 %607  ;;  %948 = vmatprep.subr.mxu1 %v812_v39  ;;  %v868_v46 = vrot.slane %v1106_v37, %v1204_v4  ;;  %v663_v47 = vmul.f32 %v656_v31, %v649_v38 }
 0x205   : > { %949 = vmatpush1.msra.mxu1 %v811_v43  ;;  %v624_v43 = vrot.slane %v619_v7, %v1204_v4  ;;  %v872_v56 = vrot.slane %v1106_v37, %v1208_v6 }
 0x206   : > { %950 = vmatprep.subr.mxu1 %v782_v49  ;;  %v1462_v54 = vpop.permute.xlu0 %611 }
 0x207   : > { %951 = vmatpush1.msra.mxu1 %v781_v48  ;;  %v615_v9 = vsel %vm262_vm8, %v1457_v50, %v1462_v54  ;;  %v617_v49 = vsel %vm262_vm8, %v1462_v54, %v1457_v50 }
 0x208   : > { %v706_v61 = vpop.permute.xlu1 %705  ;;  %952 = vmatprep.subr.mxu1 %v780_v12  ;;  %v631_v60 = vmul.f32 %v624_v43, %v617_v49 }
 0x209   : > { %953 = vmatpush1.msra.mxu1 %v779_v58  ;;  %v632_v58 = vmul.f32 %v628_v44, %v615_v9 }
 0x20a   : > { %954 = vmatprep.subr.mxu1 %v750_v62  ;;  %v710_v2 = vpop.permute.xlu0 %709 }
 0x20b   : > { %v712_v55 = vsel %vm339_vm5, %v706_v61, %v710_v2  ;;  %v714_v14 = vsel %vm339_vm5, %v710_v2, %v706_v61  ;;  %955 = vmatpush1.msra.mxu1 %v749_v63 }
 0x20c   : > { %v729_v17 = vmul.f32 %v720_v0, %v714_v14  ;;  %v730_v18 = vmul.f32 %v724_v1, %v712_v55  ;;  %v674_v19 = vpop.permute.xlu1 %673  ;;  %956 = vmatprep.subr.mxu1 %v748_v11 }
 0x20d   : > { %957 = vmatpush1.msra.mxu1 %v747_v15 }
 0x20e   : > { %958 = vmatprep.subr.mxu1 %v730_v18  ;;  %v678_v23 = vpop.permute.xlu0 %677 }
 0x20f   : > { %v680_v5 = vsel %vm315_vm7, %v674_v19, %v678_v23  ;;  %v682_v25 = vsel %vm315_vm7, %v678_v23, %v674_v19  ;;  %959 = vmatpush1.msra.mxu1 %v729_v17 }
 0x210   : > { %v697_v27 = vmul.f32 %v688_v21, %v682_v25  ;;  %v698_v28 = vmul.f32 %v692_v22, %v680_v5  ;;  %v642_v29 = vpop.permute.xlu1 %641  ;;  %960 = vmatprep.subr.mxu1 %v728_v20 }
 0x211   : > { %961 = vmatpush1.msra.mxu1 %v727_v24 }
 0x212   : > { %962 = vmatprep.subr.mxu1 %v698_v28  ;;  %v646_v33 = vpop.permute.xlu0 %645 }
 0x213   : > { %v648_v8 = vsel %vm285_vm6, %v642_v29, %v646_v33  ;;  %v650_v36 = vsel %vm285_vm6, %v646_v33, %v642_v29  ;;  %963 = vmatpush1.msra.mxu1 %v697_v27 }
 0x214   : > { %v665_v39 = vmul.f32 %v656_v31, %v650_v36  ;;  %v666_v40 = vmul.f32 %v660_v32, %v648_v8  ;;  %v610_v41 = vpop.permute.xlu1 %609  ;;  %964 = vmatprep.subr.mxu1 %v696_v30 }
 0x215   : > { %965 = vmatpush1.msra.mxu1 %v695_v34 }
 0x216   : > { %966 = vmatprep.subr.mxu1 %v666_v40  ;;  %v614_v45 = vpop.permute.xlu0 %613 }
 0x217   : > { %v616_v10 = vsel %vm262_vm8, %v610_v41, %v614_v45  ;;  %v618_v48 = vsel %vm262_vm8, %v614_v45, %v610_v41  ;;  %967 = vmatpush1.msra.mxu1 %v665_v39 }
 0x218   : > { %v633_v52 = vmul.f32 %v624_v43, %v618_v48  ;;  %v634_v4 = vmul.f32 %v628_v44, %v616_v10  ;;  %v854_v12 = vpop.permute.xlu1 %853  ;;  %968 = vmatprep.subr.mxu1 %v664_v42 }
 0x219   : > { %969 = vmatpush1.msra.mxu1 %v663_v47 }
 0x21a   : > { %970 = vmatprep.subr.mxu1 %v634_v4  ;;  %v858_v59 = vpop.permute.xlu0 %857 }
 0x21b   : > { %v860_v61 = vsel %vm472_vm0, %v854_v12, %v858_v59  ;;  %v862_v62 = vsel %vm472_vm0, %v858_v59, %v854_v12  ;;  %971 = vmatpush1.msra.mxu1 %v633_v52 }
 0x21c   : > { %v877_v63 = vmul.f32 %v868_v46, %v860_v61  ;;  %v878_v50 = vmul.f32 %v872_v56, %v862_v62  ;;  %972 = vmatprep.subr.mxu1 %v632_v58  ;;  %v852_v54 = vpop.permute.xlu1 %851 }
 0x21d   : > { %973 = vmatpush1.msra.mxu1 %v631_v60 }
 0x21e   : > { %1002 = vmatprep.subr.mxu1 %v878_v50  ;;  %v856_v6 = vpop.permute.xlu0 %855 }
 0x21f   : > { %v859_v0 = vsel %vm472_vm0, %v852_v54, %v856_v6  ;;  %v861_v1 = vsel %vm472_vm0, %v856_v6, %v852_v54  ;;  %1003 = vmatpush2.msra.mxu1 %v877_v63 }
 0x220   : > { %v875_v2 = vmul.f32 %v868_v46, %v859_v0  ;;  %v876_v11 = vmul.f32 %v872_v56, %v861_v1 }
 0x222   : > { %1004 = vmatprep.subr.mxu1 %v876_v11 }
 0x223   : > { %1005 = vmatpush2.msra.mxu1 %v875_v2 }
 0x224   : > { %1007 = vmatmul.mubr.f32.vlgmr.msra.gmra.mxu1 %v883_v13 }
 0x225   : > { %1108 = vmatprep.mubr.msk.f32.mxu1 %vm935_vm10, %v886_v57 }
 0x228   : > { %1013 = vmatmul.mubr.f32.gmra.mxu1 %v885_v16 }
 0x229   : > { %v928_v55 = vpop.permute.xlu1 %927 }
 0x22b   : > { %v933_v18 = vpop.permute.xlu0 %932 }
 0x2e4   : > { %v1008_v14 = vpop.f32.mrf.mxu1 }
 0x2e5   : > { %v1009_v15 = vadd.f32 %v1008_v14, %v928_v55 }
 0x2e6   : > { %v1010_v53 = vpop.f32.mrf.mxu1 }
 0x2e7   : > { %1019 = vst [vmem:[%s251_s28] sm:$0xff] %v1009_v15  ;;  %v1011_v17 = vadd.f32 %v1010_v53, %v928_v55 }
 0x2e8   : > { %v1014_v19 = vpop.f32.mrf.mxu1 }
 0x2e9   : > { %1020 = vst [vmem:[%s251_s28 + $0x8] sm:$0xff] %v1011_v17  ;;  %v1015_v20 = vadd.f32 %v1014_v19, %v933_v18 }
 0x2ea   : > { %v1016_v21 = vpop.f32.mrf.mxu1 }
 0x2eb   : > { %1021 = vst [vmem:[%s251_s28 + $0x10] sm:$0xf] %v1015_v20  ;;  %v1017_v22 = vadd.f32 %v1016_v21, %v933_v18 }
 0x2ed   : > { %1022 = vst [vmem:[%s251_s28 + $0x18] sm:$0xf] %v1017_v22 }
 0x2ee PF: > { %s16_s21 = sadd.s32 1, %s1140_s21  }
 0x2ef   : > { %p13_p4 = scmp.ge.s32.totalorder %s16_s21, 4  }
 0x2f1   :  { %15 = sbr.rel (!%p13_p4) target bundleno = 1 (0x1), region = 82 }

</bundles_post_ra>
